<compile_context>
chip_gen: v7x
topology: tpu7x:2x2x1
jax: 0.10.0
libtpu: 0.0.40
codegen_flags: <defaults>
</compile_context>

<pallas_src>
import jax
import jax.numpy as jnp
from jax.experimental import pallas as pl
from jax.experimental.pallas import tpu as pltpu


# ----------------------------------------------------------------------------
# Kernel
# ----------------------------------------------------------------------------
def _distortion_kernel(params_ref, z_ref, du_ref, de_ref):
    """One grid step = one lane-dense (TILE_ROWS, LANE) slab of one source.

    params_ref : SMEM [num_ls * 5] f32, per source: (L00, L10, L11, mu_u, mu_e)
    z_ref      : VMEM [2, TILE_ROWS, LANE] f32 standard-normal base samples
    du_ref/de_ref : VMEM [TILE_ROWS, LANE] output distortions (u / e)
    """
    ls = pl.program_id(0)   # light source index

    base = ls * 5
    l00 = params_ref[base + 0]
    l10 = params_ref[base + 1]
    l11 = params_ref[base + 2]
    mu_u = params_ref[base + 3]
    mu_e = params_ref[base + 4]

    z_u = z_ref[0]
    z_e = z_ref[1]

    # Affine transform by the Cholesky factor of the covariance + mean (VPU).
    du_ref[...] = (l00 * z_u + mu_u).astype(du_ref.dtype)
    de_ref[...] = (l10 * z_u + l11 * z_e + mu_e).astype(de_ref.dtype)


# ----------------------------------------------------------------------------
# Tiling helpers
# ----------------------------------------------------------------------------
_TARGET_OUT_BLOCK_BYTES = 6 << 20   # ~6 MiB per output block (perf review)


def _round_up(x: int, m: int) -> int:
    return ((x + m - 1) // m) * m


def _vmem_capacity_bytes() -> int:
    """Generation-aware VMEM capacity; conservative fallback (v7x per-TC)."""
    try:
        return int(pltpu.get_tpu_info().vmem_capacity_bytes)
    except Exception:
        return 64 << 20


def _plan_tiling(total: int, out_dtype, num_ls: int):
    """Pick (lane, rows, tile_rows, rows_padded, n_row_tiles, vmem_limit)."""
    bytes_out = jnp.dtype(out_dtype).itemsize
    # Packed-tile sublane minimum: 8 for 4-byte, 16 for 2-byte, 32 for 1-byte.
    sublane = {4: 8, 2: 16, 1: 32}.get(bytes_out, 8)

    # Lane width: largest power-of-two multiple of 128 (<= 2048) not larger
    # than the (128-padded) problem.
    total_min = _round_up(total, 128)
    lane = 128
    while lane < 2048 and lane * 2 <= total_min:
        lane *= 2
    rows = -(-total // lane)  # ceil

    # VMEM budget: half of physical capacity (leaves room for the runtime).
    vmem_cap = _vmem_capacity_bytes()
    budget = vmem_cap // 2
    # Bytes resident per row-of-lane with 2-deep pipelining:
    #   z block (2 channels, f32, double-buffered) + 2 outputs (double-buf).
    per_row = lane * 2 * (2 * 4 + 2 * bytes_out)
    rows_budget = max(1, budget // per_row)
    rows_block = max(1, _TARGET_OUT_BLOCK_BYTES // (lane * bytes_out))
    target_rows = max(sublane, min(rows_budget, rows_block))

    if rows <= target_rows:
        tile_rows = rows                              # full extent -> legal
    else:
        tile_rows = max(sublane, (target_rows // sublane) * sublane)
    rows_padded = _round_up(rows, tile_rows)
    n_row_tiles = rows_padded // tile_rows

    # v7x megacore load balance: aim for >= 4 blocks (2 per TensorCore).
    while num_ls * n_row_tiles < 4 and tile_rows >= 2 * sublane:
        tile_rows = max(sublane, ((tile_rows // 2) // sublane) * sublane)
        rows_padded = _round_up(rows, tile_rows)
        n_row_tiles = rows_padded // tile_rows

    peak_vmem = 2 * tile_rows * lane * (2 * 4 + 2 * bytes_out)
    vmem_limit = int(min(vmem_cap, max(peak_vmem + (8 << 20), 32 << 20)))
    return lane, rows, tile_rows, rows_padded, n_row_tiles, vmem_limit


# ----------------------------------------------------------------------------
# Wrapper
# ----------------------------------------------------------------------------
def sample_distortions_pallas(params_flat, z, out_dtype=jnp.float32):
    """params_flat: [num_ls*5] f32; z: [num_ls, 2, num_rays, num_points] f32.

    Returns (du, de), each [num_ls, num_rays, num_points] of out_dtype.
    """
    num_ls, _, num_rays, num_points = z.shape
    total = num_rays * num_points
    lane, rows, tile_rows, rows_padded, n_row_tiles, vmem_limit = _plan_tiling(
        total, out_dtype, num_ls)

    # Lane-dense retiling of the base samples (layout plumbing in XLA).
    z_flat = z.reshape(num_ls, 2, total).astype(jnp.float32)
    pad = rows_padded * lane - total
    if pad:
        z_flat = jnp.pad(z_flat, ((0, 0), (0, 0), (0, pad)))
    z_lane = z_flat.reshape(num_ls, 2, rows_padded, lane)

    def z_idx(ls, rt, params):      # prefetch refs are positional
        return (ls, 0, rt, 0)

    def out_idx(ls, rt, params):
        return (ls, rt, 0)

    grid_spec = pltpu.PrefetchScalarGridSpec(
        num_scalar_prefetch=1,      # params table -> SMEM
        grid=(num_ls, n_row_tiles),
        in_specs=[pl.BlockSpec((None, 2, tile_rows, lane), z_idx)],
        out_specs=(pl.BlockSpec((None, tile_rows, lane), out_idx),
                   pl.BlockSpec((None, tile_rows, lane), out_idx)),
    )

    out_shape = (
        jax.ShapeDtypeStruct((num_ls, rows_padded, lane), out_dtype),
        jax.ShapeDtypeStruct((num_ls, rows_padded, lane), out_dtype),
    )

    du, de = pl.pallas_call(
        _distortion_kernel,
        grid_spec=grid_spec,
        out_shape=out_shape,
        compiler_params=pltpu.CompilerParams(
            # Independent blocks on both axes -> megacore sharding on v7x.
            dimension_semantics=("parallel", "parallel"),
            vmem_limit_bytes=vmem_limit,
        ),
    )(params_flat, z_lane)

    du = du.reshape(num_ls, rows_padded * lane)[:, :total]
    de = de.reshape(num_ls, rows_padded * lane)[:, :total]
    return (du.reshape(num_ls, num_rays, num_points),
            de.reshape(num_ls, num_rays, num_points))


# ----------------------------------------------------------------------------
# Light source stand-ins + array container
# ----------------------------------------------------------------------------
class SunLightSource:
    """Deterministic synthetic stand-in for an ARTIST ``Sun`` light source.

    ARTIST's Sun samples (u, e) ray-distortion angles from a bivariate normal
    whose parameters are loaded from HDF5.  This stand-in builds a
    deterministic, mildly correlated distribution so the full affine path
    (Cholesky scale + mean shift) is exercised.
    """

    def __init__(self, index: int, num_rays: int):
        self.num_rays = num_rays
        sigma_u = 1e-3 * (index + 1)
        sigma_e = 2e-3 * (index + 1)
        rho = 0.5
        self.mean = jnp.array([1e-3 * index, -2e-3 * index], jnp.float32)
        self.cov = jnp.array(
            [[sigma_u * sigma_u, rho * sigma_u * sigma_e],
             [rho * sigma_u * sigma_e, sigma_e * sigma_e]],
            jnp.float32,
        )


class LightSourceArrayPallas:
    """JAX/Pallas counterpart of artist.scene.LightSourceArray."""

    def __init__(self, light_source_list):
        self.light_source_list = light_source_list

    def forward(self):
        # Faithful to the PyTorch module: forward() is not implemented.
        # TODO(synk): torch forward() raises NotImplementedError; the array's
        # real compute (ray-distortion sampling) is exposed below instead.
        raise NotImplementedError("Not Implemented!")

    def _params_flat(self):
        rows = []
        for ls in self.light_source_list:
            chol = jnp.linalg.cholesky(ls.cov)  # [2, 2] lower
            rows.append(jnp.stack(
                [chol[0, 0], chol[1, 0], chol[1, 1], ls.mean[0], ls.mean[1]]))
        return jnp.concatenate(rows).astype(jnp.float32)

    def _base_samples(self, num_points: int, key):
        num_ls = len(self.light_source_list)
        num_rays = self.light_source_list[0].num_rays
        return jax.random.normal(
            key, (num_ls, 2, num_rays, num_points), jnp.float32)

    def get_distortions(self, num_points: int, key, out_dtype=jnp.float32):
        """Sample (u, e) ray distortions for every light source.

        Returns two arrays of shape [num_light_sources, num_rays, num_points].
        """
        params_flat = self._params_flat()
        z = self._base_samples(num_points, key)
        return sample_distortions_pallas(params_flat, z, out_dtype=out_dtype)


# ----------------------------------------------------------------------------
# Main: small deterministic run + exact & statistical correctness checks
# ----------------------------------------------------------------------------
if __name__ == "__main__":
    key = jax.random.PRNGKey(0)

    num_light_sources = 2
    num_rays = 32        # 32 * 256 = 8192 samples per light source
    num_points = 256     # lane-aligned

    light_sources = [SunLightSource(i, num_rays) for i in range(num_light_sources)]
    array = LightSourceArrayPallas(light_sources)

    dist_u, dist_e = array.get_distortions(num_points=num_points, key=key)
    jax.block_until_ready((dist_u, dist_e))

    assert dist_u.shape == (num_light_sources, num_rays, num_points)
    assert dist_e.shape == (num_light_sources, num_rays, num_points)
    assert bool(jnp.all(jnp.isfinite(dist_u)))
    assert bool(jnp.all(jnp.isfinite(dist_e)))

    # Exact reference check: the kernel is a deterministic affine transform of
    # the base samples, so it must match a pure-JAX recomputation.
    z = array._base_samples(num_points, key)
    for i, ls in enumerate(light_sources):
        chol = jnp.linalg.cholesky(ls.cov)
        ref_u = chol[0, 0] * z[i, 0] + ls.mean[0]
        ref_e = chol[1, 0] * z[i, 0] + chol[1, 1] * z[i, 1] + ls.mean[1]
        assert jnp.allclose(dist_u[i], ref_u, rtol=1e-5, atol=1e-8), i
        assert jnp.allclose(dist_e[i], ref_e, rtol=1e-5, atol=1e-8), i

    # Light statistical sanity check against the requested bivariate normal.
    for i, ls in enumerate(light_sources):
        du = dist_u[i].ravel()
        de = dist_e[i].ravel()
        sig_u = float(jnp.sqrt(ls.cov[0, 0]))
        sig_e = float(jnp.sqrt(ls.cov[1, 1]))
        rho = float(ls.cov[0, 1] / jnp.sqrt(ls.cov[0, 0] * ls.cov[1, 1]))
        mu_u_hat = float(jnp.mean(du))
        mu_e_hat = float(jnp.mean(de))
        sd_u_hat = float(jnp.std(du))
        sd_e_hat = float(jnp.std(de))
        rho_hat = float(jnp.mean((du - mu_u_hat) * (de - mu_e_hat))
                        / (sd_u_hat * sd_e_hat))
        assert abs(mu_u_hat - float(ls.mean[0])) < 0.1 * sig_u, (i, mu_u_hat)
        assert abs(mu_e_hat - float(ls.mean[1])) < 0.1 * sig_e, (i, mu_e_hat)
        assert abs(sd_u_hat - sig_u) < 0.15 * sig_u, (i, sd_u_hat, sig_u)
        assert abs(sd_e_hat - sig_e) < 0.15 * sig_e, (i, sd_e_hat, sig_e)
        assert abs(rho_hat - rho) < 0.1, (i, rho_hat, rho)

    print("KERNEL_OK")
</pallas_src>

<mosaic_0001>
module attributes {stable_mosaic.version = 11 : i64} {
  func.func @_distortion_kernel(%arg0: i32, %arg1: i32, %arg2: memref<10xf32, #tpu.memory_space<smem>>, %arg3: memref<1x2x4x2048xf32, #tpu.memory_space<vmem>>, %arg4: memref<1x4x2048xf32, #tpu.memory_space<vmem>>, %arg5: memref<1x4x2048xf32, #tpu.memory_space<vmem>>) attributes {dimension_semantics = [#tpu.dimension_semantics<parallel>, #tpu.dimension_semantics<parallel>], iteration_bounds = array<i64: 2, 1>, scalar_prefetch = 1 : i64, scratch_operands = 0 : i64, tpu.core_type = #tpu.core_type<tc>, window_params = [{transform_indices = @transform_0, window_bounds = array<i64: 1, 2, 4, 2048>}, {transform_indices = @transform_1, window_bounds = array<i64: 1, 4, 2048>}, {transform_indices = @transform_2, window_bounds = array<i64: 1, 4, 2048>}]} {
    %c5_i32 = arith.constant 5 : i32
    %0 = arith.muli %arg0, %c5_i32 : i32
    %c0_i32 = arith.constant 0 : i32
    %1 = arith.addi %0, %c0_i32 : i32
    %2 = arith.index_cast %1 : i32 to index
    %3 = memref.load %arg2[%2] : memref<10xf32, #tpu.memory_space<smem>>
    %c1_i32 = arith.constant 1 : i32
    %4 = arith.addi %0, %c1_i32 : i32
    %5 = arith.index_cast %4 : i32 to index
    %6 = memref.load %arg2[%5] : memref<10xf32, #tpu.memory_space<smem>>
    %c2_i32 = arith.constant 2 : i32
    %7 = arith.addi %0, %c2_i32 : i32
    %8 = arith.index_cast %7 : i32 to index
    %9 = memref.load %arg2[%8] : memref<10xf32, #tpu.memory_space<smem>>
    %c3_i32 = arith.constant 3 : i32
    %10 = arith.addi %0, %c3_i32 : i32
    %11 = arith.index_cast %10 : i32 to index
    %12 = memref.load %arg2[%11] : memref<10xf32, #tpu.memory_space<smem>>
    %c4_i32 = arith.constant 4 : i32
    %13 = arith.addi %0, %c4_i32 : i32
    %14 = arith.index_cast %13 : i32 to index
    %15 = memref.load %arg2[%14] : memref<10xf32, #tpu.memory_space<smem>>
    %c0 = arith.constant 0 : index
    %c0_0 = arith.constant 0 : index
    %c0_1 = arith.constant 0 : index
    %c0_2 = arith.constant 0 : index
    %16 = vector.load %arg3[%c0, %c0_0, %c0_1, %c0_2] : memref<1x2x4x2048xf32, #tpu.memory_space<vmem>>, vector<1x1x4x2048xf32>
    %17 = vector.shape_cast %16 : vector<1x1x4x2048xf32> to vector<4x2048xf32>
    %c0_3 = arith.constant 0 : index
    %c1 = arith.constant 1 : index
    %c0_4 = arith.constant 0 : index
    %c0_5 = arith.constant 0 : index
    %18 = vector.load %arg3[%c0_3, %c1, %c0_4, %c0_5] : memref<1x2x4x2048xf32, #tpu.memory_space<vmem>>, vector<1x1x4x2048xf32>
    %19 = vector.shape_cast %18 : vector<1x1x4x2048xf32> to vector<4x2048xf32>
    %20 = vector.broadcast %3 : f32 to vector<4x2048xf32>
    %21 = arith.mulf %20, %17 : vector<4x2048xf32>
    %22 = vector.broadcast %12 : f32 to vector<4x2048xf32>
    %23 = arith.addf %21, %22 : vector<4x2048xf32>
    %c0_6 = arith.constant 0 : index
    %c0_7 = arith.constant 0 : index
    %c0_8 = arith.constant 0 : index
    %24 = vector.load %arg4[%c0_6, %c0_7, %c0_8] : memref<1x4x2048xf32, #tpu.memory_space<vmem>>, vector<1x4x2048xf32>
    %25 = vector.shape_cast %24 : vector<1x4x2048xf32> to vector<4x2048xf32>
    %26 = vector.shape_cast %23 : vector<4x2048xf32> to vector<1x4x2048xf32>
    tpu.vector_store %arg4[%c0_6, %c0_7, %c0_8], %26 {strides = array<i32>} : memref<1x4x2048xf32, #tpu.memory_space<vmem>>, vector<1x4x2048xf32>,
    %27 = vector.broadcast %6 : f32 to vector<4x2048xf32>
    %28 = arith.mulf %27, %17 : vector<4x2048xf32>
    %29 = vector.broadcast %9 : f32 to vector<4x2048xf32>
    %30 = arith.mulf %29, %19 : vector<4x2048xf32>
    %31 = arith.addf %28, %30 : vector<4x2048xf32>
    %32 = vector.broadcast %15 : f32 to vector<4x2048xf32>
    %33 = arith.addf %31, %32 : vector<4x2048xf32>
    %c0_9 = arith.constant 0 : index
    %c0_10 = arith.constant 0 : index
    %c0_11 = arith.constant 0 : index
    %34 = vector.load %arg5[%c0_9, %c0_10, %c0_11] : memref<1x4x2048xf32, #tpu.memory_space<vmem>>, vector<1x4x2048xf32>
    %35 = vector.shape_cast %34 : vector<1x4x2048xf32> to vector<4x2048xf32>
    %36 = vector.shape_cast %33 : vector<4x2048xf32> to vector<1x4x2048xf32>
    tpu.vector_store %arg5[%c0_9, %c0_10, %c0_11], %36 {strides = array<i32>} : memref<1x4x2048xf32, #tpu.memory_space<vmem>>, vector<1x4x2048xf32>,
    return
  }
  func.func @transform_0(%arg0: i32, %arg1: i32, %arg2: memref<10xf32, #tpu.memory_space<smem>>) -> (i32, i32, i32, i32) {
    %c0_i32 = arith.constant 0 : i32
    %c0_i32_0 = arith.constant 0 : i32
    %c0_i32_1 = arith.constant 0 : i32
    return %arg0, %c0_i32, %arg1, %c0_i32_0 : i32, i32, i32, i32
  }
  func.func @transform_1(%arg0: i32, %arg1: i32, %arg2: memref<10xf32, #tpu.memory_space<smem>>) -> (i32, i32, i32) {
    %c0_i32 = arith.constant 0 : i32
    %c0_i32_0 = arith.constant 0 : i32
    return %arg0, %arg1, %c0_i32 : i32, i32, i32
  }
  func.func @transform_2(%arg0: i32, %arg1: i32, %arg2: memref<10xf32, #tpu.memory_space<smem>>) -> (i32, i32, i32) {
    %c0_i32 = arith.constant 0 : i32
    %c0_i32_0 = arith.constant 0 : i32
    return %arg0, %arg1, %c0_i32 : i32, i32, i32
  }
}

</mosaic_0001>

<bundles_post_ra>
// kernel: tpu_custom_call.1
= control target key start
LH: loop header
LB: loop body
LE: loop exit
PB: predicated region body
PF: predicated region fallthrough
CT: control target
= control target key end

     0   :  { %s1039_s0 = inlined_call_operand.hbm [shape: f32[10], index: 0, kind: input, shape index: {}]   ;;  %s1040_s1 = inlined_call_operand.hbm [shape: f32[2,2,4,2048], index: 1, kind: input, shape index: {}]   ;;  %s1041_s2 = inlined_call_operand.hbm [shape: f32[2,4,2048], index: 2, kind: output, shape index: {0}]   ;;  %s1042_s3 = inlined_call_operand.hbm [shape: f32[2,4,2048], index: 3, kind: output, shape index: {1}]  }
   0x1   :  { %s551_s14 = scalar_lea.hbm %s1039_s0, 16 }
   0x2   :  { %p552_p0 = scmp.ne.s32.totalorder %s1039_s0, %s551_s14  ;;  %p555_p1 = scmp.lt.u32.totalorder %s551_s14, %s1039_s0 }
   0x4   :  { %p557_p2 = pnand %p555_p1, %p552_p0 }
   0x6   :  { %560 = shalt.err (!%p557_p2)  }
   0x7   :  { %s709_s19 = smov [#allocation3]  }
   0x8   :  { %10 = dma.hbm_to_smem %s1039_s0, 16, %s709_s19, [#allocation2] }
   0x9   :  { %671 = dma.done.wait [#allocation2], 16 }
   0xa   :  { %672 = vsyncadd [#allocation2], 4294967280 }
   0xb   :  { %12 = sfence }
   0xc   :  { %13 = vsyncpa [#allocation5], 0 }
   0xd   :  { %15 = vsyncpa [#allocation5 + $0x1], 0 }
   0xe   :  { %16 = vsyncpa [#allocation6], 0 }
   0xf   :  { %18 = vsyncpa [#allocation6 + $0x1], 0 }
  0x10   :  { %19 = vsyncpa [#allocation9], 0 }
  0x11   :  { %21 = vsyncpa [#allocation9 + $0x1], 0  ;;  %s747_s22 = smov 0   ;;  %s749_s23 = smov 0  }
  0x12   :  { %s751_s24 = smov 0   ;;  %s753_s25 = smov 0  }
  0x13   :  { %s755_s26 = smov 0   ;;  %s757_s0 = smov 0  }
  0x14 LB: > { %s451_s27 = sadd.s32 4294967295, %s707_s0   ;;  %s452_s28 = sadd.s32 4294967294, %s707_s0   ;;  %s707_s0 = sphi %s757_s0, %s27_s0   ;;  %s703_s26 = sphi %s755_s26, %s1057_s26   ;;  %s699_s25 = sphi %s753_s25, %s1056_s25   ;;  %s695_s24 = sphi %s751_s24, %s1055_s24   ;;  %s691_s23 = sphi %s749_s23, %s1054_s23   ;;  %s687_s22 = sphi %s747_s22, %s1053_s22  }
  0x15   : > { %s39_s29 = sadd.s32 1, %s703_s26  ;;  %s48_s30 = sadd.s32 1, %s695_s24 }
  0x16   : > { %p41_p3 = scmp.ge.s32.totalorder %s39_s29, 2  ;;  %p55_p4 = scmp.ne.s32.totalorder %s695_s24, %s691_s23 }
  0x17   : > { %p56_p5 = scmp.eq.s32.totalorder %s707_s0, 0  ;;  %p61_p6 = scmp.ne.s32.totalorder %s691_s23, %s687_s22 }
  0x18   : > { %s1059_s29 = smov (%p41_p3, %s39_s29), 0  ;;  %p62_p8 = scmp.eq.s32.totalorder %s451_s27, 0 }
  0x19   : > { %p788_p7 = por %p56_p5, %p55_p4  ;;  %s43_s5 = ssub.s32 %s703_s26, %s1059_s29 }
  0x1a   : > { %p87_p9 = scmp.eq.s32.totalorder %s451_s27, 1  ;;  %p46_p10 = scmp.eq.s32.totalorder %s43_s5, 0 }
  0x1b   : > { %p794_p11 = por %p62_p8, %p61_p6  ;;  %p93_p13 = scmp.eq.s32.totalorder %s452_s28, 1 }
  0x1c   : > { %p798_p12 = por %p87_p9, %p55_p4  ;;  %p498_p2 = scmp.lt.s32.totalorder %s707_s0, 2 }
  0x1d   : > { %s803_s8 = scalar_select %p46_p10, %s695_s24, %s48_s30  }
  0x1e   : > { %s1046_s7 = scalar_select %p798_p12, 1, 0 }
  0x1f   : > { %p805_p0 = por %p93_p13, %p61_p6  ;;  %s141_s10 = sand.u32 1, %s695_s24  }
  0x20   : > { %s455_s11 = sshll.u32 %s141_s10, 7  ;;  %s478_s12 = sshll.u32 %s703_s26, 11 }
  0x21   : > { %s1047_s9 = scalar_select %p805_p0, 1, 0 }
  0x22   : > { %s816_s15 = scalar_lea.hbm %s1040_s1, %s478_s12  ;;  %s145_s16 = scalar_lea.vmem [#allocation4], %s455_s11 }
  0x23   : > { %s154_s17 = sshll.u32 %s145_s16, 4  ;;  %p822_p3 = pnand %p498_p2, %p788_p7  ;;  %s818_s17 = int_to_ptr.vmem [resolvable:$true] %s154_s17 }
  0x24   : > { %s827_s19 = scalar_lea.sflag [#allocation5], %s141_s10  ;;  %s561_s20 = scalar_lea.hbm %s816_s15, 2048 }
  0x25   : > { %p562_p5 = scmp.ne.s32.totalorder %s816_s15, %s561_s20  ;;  %p563_p6 = pneg %p822_p3 }
  0x26   : > { %s566_s28 = scalar_lea.hbm %s1040_s1, 4096  ;;  %p567_p7 = scmp.lt.u32.totalorder %s816_s15, %s1040_s1 }
  0x27   : > { %p564_p8 = pnand %p563_p6, %p562_p5  ;;  %p568_p10 = scmp.lt.u32.totalorder %s566_s28, %s561_s20 }
  0x28   : > { %p570_p2 = scmp.lt.u32.totalorder %s561_s20, %s816_s15 }
  0x29   : > { %p565_p9 = pneg %p564_p8  ;;  %p569_p13 = por %p568_p10, %p567_p7 }
  0x2b   : > { %p571_p1 = por %p570_p2, %p569_p13 }
  0x2d   : > { %p572_p4 = pnand %p571_p1, %p565_p9 }
  0x2f   : > { %575 = shalt.err (!%p572_p4)
}
  0x30   : > { %s576_s5 = scalar_lea.vmem %s818_s17, 2048  ;;  %s710_s10 = smov [#allocation4]  }
  0x31   : > { %p577_p5 = scmp.ne.s32.totalorder %s818_s17, %s576_s5  ;;  %s581_s11 = sshll.u32 %s710_s10, 4  ;;  %s582_s11 = int_to_ptr.vmem [resolvable:$false] %s581_s11 }
  0x32   : > { %s583_s12 = scalar_lea.vmem %s582_s11, 4096  ;;  %p584_p12 = scmp.lt.s32.totalorder %s818_s17, %s582_s11 }
  0x33   : > { %p579_p8 = pnand %p577_p5, %p563_p6  ;;  %p585_p7 = scmp.lt.s32.totalorder %s583_s12, %s576_s5 }
  0x35   : > { %p580_p0 = pneg %p579_p8  ;;  %p586_p10 = por %p585_p7, %p584_p12 }
  0x37   : > { %p587_p13 = pnand %p586_p10, %p580_p0 }
  0x39   : > { %590 = shalt.err (!%p587_p13)
}
  0x3a   : > { %s711_s13 = smov 1024   ;;  %s712_s14 = smov 64  }
  0x3b   : > { %490 = dma.hbm_to_vmem [thread:$0]  (!%p822_p3), %s816_s15, 2048, %s818_s17, %s827_s19, %s711_s13, %s711_s13, %s712_s14  }
  0x3c   : > { %p162_p1 = scmp.lt.s32.totalorder %s707_s0, 3  ;;  %p1049_p4 = scmp.ge.s32.totalorder %s707_s0, 1 }
  0x3e   : > { %p163_p6 = pnand %p1049_p4, %p162_p1 }
  0x3f   : > { %s859_s16 = sand.u32 (!%p163_p6), 1, %s691_s23  }
  0x40   : > { %166 = sbr.rel (%p163_p6) target bundleno = 129 (0x81), region = 24  ;;  %s459_s20 = sshll.u32 (!%p163_p6), %s859_s16, 7 }
  0x41   : > { %s169_s21 = scalar_lea.sflag (!%p163_p6), [#allocation5], %s859_s16  ;;  %s863_s27 = scalar_lea.vmem (!%p163_p6), [#allocation4], %s459_s20 }
  0x47   : > { %674 = dma.done.wait (%p794_p11), %s169_s21, 2048  }
  0x48   : > { %676 = vsyncadd (%p794_p11), %s169_s21, 4294965248  ;;  %s198_s15 = smul.u32 5, %s699_s25  ;;  %s460_s17 = sshll.u32 %s859_s16, 6  ;;  %v208_v0 = vld [vmem:[%s863_s27] sm:$0xff]  ;;  %v209_v2 = vld [vmem:[%s863_s27 + $0x8] sm:$0xff] }
  0x49   : > { %v210_v3 = vld [vmem:[%s863_s27 + $0x10] sm:$0xff]  ;;  %v211_v4 = vld [vmem:[%s863_s27 + $0x18] sm:$0xff]  ;;  %v212_v9 = vld [vmem:[%s863_s27 + $0x20] sm:$0xff]  ;;  %s479_s12 = sshll.u32 %s699_s25, 10  ;;  %s896_s13 = scalar_lea.vmem [#allocation7], %s460_s17 }
  0x4a   : > { %s199_s18 = sld [smem:[#allocation3 + %s198_s15]]  ;;  %s204_s19 = sadd.s32 3, %s198_s15  ;;  %v883_v10 = vld [vmem:[%s863_s27 + $0x28] sm:$0xff]  ;;  %v886_v11 = vld [vmem:[%s863_s27 + $0x30] sm:$0xff]  ;;  %v891_v16 = vld [vmem:[%s863_s27 + $0x38] sm:$0xff] }
  0x4b   : > { %s205_s28 = sld [smem:[#allocation3 + %s204_s19]]  ;;  %s200_s30 = sadd.s32 1, %s198_s15  ;;  %v462_v21 = vld [vmem:[%s863_s27 + $0x40] sm:$0xff]  ;;  %v463_v22 = vld [vmem:[%s863_s27 + $0x48] sm:$0xff]  ;;  %v464_v27 = vld [vmem:[%s863_s27 + $0x50] sm:$0xff] }
  0x4c   : > { %s871_s4 = sld [smem:[#allocation3 + %s200_s30]]  ;;  %s202_s5 = sadd.s32 2, %s198_s15  ;;  %v465_v28 = vld [vmem:[%s863_s27 + $0x58] sm:$0xff]  ;;  %v466_v33 = vld [vmem:[%s863_s27 + $0x60] sm:$0xff]  ;;  %v467_v38 = vld [vmem:[%s863_s27 + $0x68] sm:$0xff] }
  0x4d   : > { %s873_s6 = sld [smem:[#allocation3 + %s202_s5]]  ;;  %s206_s10 = sadd.s32 4, %s198_s15  ;;  %v468_v47 = vld [vmem:[%s863_s27 + $0x70] sm:$0xff] }
  0x4e   : > { %s875_s11 = sld [smem:[#allocation3 + %s206_s10]]  ;;  %s316_s14 = sshll.u32 %s896_s13, 4  ;;  %s924_s14 = int_to_ptr.vmem [resolvable:$true] %s316_s14 }
  0x4f   : > { %s922_s15 = scalar_lea.hbm %s1041_s2, %s479_s12  ;;  %s591_s19 = scalar_lea.vmem %s924_s14, 1024 }
  0x50   : > { %v225_v1 = vstv %s199_s18  ;;  %s295_s18 = scalar_lea.sflag [#allocation6], %s859_s16  ;;  %p592_p11 = scmp.ne.s32.totalorder %s924_s14, %s591_s19 }
  0x51   : > { %v226_v5 = vmul.f32 %v225_v1, %v208_v0  ;;  %v234_v6 = vstv %s205_s28  ;;  %v227_v7 = vmul.f32 %v225_v1, %v209_v2  ;;  %v228_v8 = vmul.f32 %v225_v1, %v210_v3  ;;  %p1050_p12 = scmp.ne.s32.totalorder %s1046_s7, 0  ;;  %s713_s28 = smov [#allocation7]  }
  0x52   : > { %v229_v12 = vmul.f32 %v225_v1, %v211_v4  ;;  %v230_v13 = vmul.f32 %v225_v1, %v212_v9  ;;  %v231_v14 = vmul.f32 %v225_v1, %v883_v10  ;;  %v232_v15 = vmul.f32 %v225_v1, %v886_v11  ;;  %s595_s30 = sshll.u32 %s713_s28, 4  ;;  %s596_s30 = int_to_ptr.vmem [resolvable:$false] %s595_s30 }
  0x53   : > { %v235_v17 = vadd.f32 %v234_v6, %v226_v5  ;;  %v236_v18 = vadd.f32 %v234_v6, %v227_v7  ;;  %v237_v19 = vadd.f32 %v234_v6, %v228_v8  ;;  %v233_v20 = vmul.f32 %v225_v1, %v891_v16  ;;  %p593_p0 = pnand %p592_p11, %p1050_p12  ;;  %p598_p9 = scmp.lt.s32.totalorder %s924_s14, %s596_s30 }
  0x54   : > { %v238_v23 = vadd.f32 %v234_v6, %v229_v12  ;;  %v239_v24 = vadd.f32 %v234_v6, %v230_v13  ;;  %v240_v25 = vadd.f32 %v234_v6, %v231_v14  ;;  %v241_v26 = vadd.f32 %v234_v6, %v232_v15 }
  0x55   : > { %243 = vst [vmem:[%s896_s13] sm:$0xff] %v235_v17  ;;  %244 = vst [vmem:[%s896_s13 + $0x8] sm:$0xff] %v236_v18  ;;  %v242_v29 = vadd.f32 %v234_v6, %v233_v20  ;;  %v908_v30 = vstv %s871_s4  ;;  %v911_v31 = vstv %s873_s6  ;;  %p594_p3 = pneg %p593_p0  ;;  %s597_s4 = scalar_lea.vmem %s596_s30, 2048 }
  0x56   : > { %245 = vst [vmem:[%s896_s13 + $0x10] sm:$0xff] %v237_v19  ;;  %v914_v32 = vstv %s875_s11  ;;  %246 = vst [vmem:[%s896_s13 + $0x18] sm:$0xff] %v238_v23  ;;  %v252_v34 = vmul.f32 %v908_v30, %v208_v0  ;;  %v261_v35 = vmul.f32 %v462_v21, %v911_v31  ;;  %v253_v36 = vmul.f32 %v908_v30, %v209_v2  ;;  %p599_p2 = scmp.lt.s32.totalorder %s597_s4, %s591_s19 }
  0x57   : > { %247 = vst [vmem:[%s896_s13 + $0x20] sm:$0xff] %v239_v24  ;;  %248 = vst [vmem:[%s896_s13 + $0x28] sm:$0xff] %v240_v25  ;;  %v262_v37 = vmul.f32 %v463_v22, %v911_v31  ;;  %v254_v39 = vmul.f32 %v908_v30, %v210_v3  ;;  %v263_v40 = vmul.f32 %v464_v27, %v911_v31 }
  0x58   : > { %249 = vst [vmem:[%s896_s13 + $0x30] sm:$0xff] %v241_v26  ;;  %250 = vst [vmem:[%s896_s13 + $0x38] sm:$0xff] %v242_v29  ;;  %v255_v41 = vmul.f32 %v908_v30, %v211_v4  ;;  %v264_v42 = vmul.f32 %v465_v28, %v911_v31  ;;  %v269_v43 = vadd.f32 %v261_v35, %v252_v34  ;;  %p600_p5 = por %p599_p2, %p598_p9 }
  0x59   : > { %v270_v44 = vadd.f32 %v262_v37, %v253_v36  ;;  %v256_v45 = vmul.f32 %v908_v30, %v212_v9  ;;  %v265_v46 = vmul.f32 %v466_v33, %v911_v31 }
  0x5a   : > { %p601_p8 = pnand %p600_p5, %p594_p3 }
  0x5c   : > { %604 = shalt.err (!%p601_p8)
}
  0x5d   : > { %s605_s5 = scalar_lea.hbm %s922_s15, 1024  ;;  %s609_s11 = scalar_lea.hbm %s1041_s2, 2048 }
  0x5e   : > { %p606_p7 = scmp.ne.s32.totalorder %s922_s15, %s605_s5  ;;  %p610_p1 = scmp.lt.u32.totalorder %s922_s15, %s1041_s2 }
  0x5f   : > { %p611_p4 = scmp.lt.u32.totalorder %s609_s11, %s605_s5  ;;  %p613_p11 = scmp.lt.u32.totalorder %s605_s5, %s922_s15 }
  0x60   : > { %p607_p10 = pnand %p606_p7, %p1050_p12 }
  0x61   : > { %p612_p6 = por %p611_p4, %p610_p1 }
  0x62   : > { %p608_p13 = pneg %p607_p10 }
  0x63   : > { %p614_p0 = por %p613_p11, %p612_p6 }
  0x65   : > { %p615_p3 = pnand %p614_p0, %p608_p13 }
  0x67   : > { %618 = shalt.err (!%p615_p3)
}
  0x68   : > { %483 = dma.vmem_to_hbm [thread:$0]  (%p1050_p12), %s924_s14, 1024, %s922_s15, %s295_s18   ;;  %v271_v48 = vadd.f32 %v263_v40, %v254_v39  ;;  %v272_v49 = vadd.f32 %v264_v42, %v255_v41  ;;  %v257_v50 = vmul.f32 %v908_v30, %v883_v10  ;;  %v266_v51 = vmul.f32 %v467_v38, %v911_v31  ;;  %v469_v52 = vld [vmem:[%s863_s27 + $0x78] sm:$0xff] }
  0x69   : > { %v278_v53 = vadd.f32 %v914_v32, %v269_v43  ;;  %v279_v54 = vadd.f32 %v914_v32, %v270_v44  ;;  %v273_v55 = vadd.f32 %v265_v46, %v256_v45  ;;  %v258_v56 = vmul.f32 %v908_v30, %v886_v11  ;;  %s197_s14 = scalar_lea.vmem [#allocation8], %s460_s17  ;;  %s990_s15 = scalar_lea.hbm %s1042_s3, %s479_s12 }
  0x6a   : > { %v280_v57 = vadd.f32 %v914_v32, %v271_v48  ;;  %v281_v58 = vadd.f32 %v914_v32, %v272_v49  ;;  %v274_v59 = vadd.f32 %v266_v51, %v257_v50  ;;  %v267_v60 = vmul.f32 %v468_v47, %v911_v31  ;;  %s332_s27 = sshll.u32 %s197_s14, 4  ;;  %s300_s18 = scalar_lea.sflag [#allocation9], %s859_s16  ;;  %s992_s27 = int_to_ptr.vmem [resolvable:$true] %s332_s27 }
  0x6b   : > { %286 = vst [vmem:[%s197_s14] sm:$0xff] %v278_v53  ;;  %287 = vst [vmem:[%s197_s14 + $0x8] sm:$0xff] %v279_v54  ;;  %v282_v61 = vadd.f32 %v914_v32, %v273_v55  ;;  %v259_v62 = vmul.f32 %v908_v30, %v891_v16  ;;  %v268_v63 = vmul.f32 %v469_v52, %v911_v31  ;;  %s619_s19 = scalar_lea.vmem %s992_s27, 1024  ;;  %s714_s28 = smov [#allocation8]  }
  0x6c   : > { %288 = vst [vmem:[%s197_s14 + $0x10] sm:$0xff] %v280_v57  ;;  %289 = vst [vmem:[%s197_s14 + $0x18] sm:$0xff] %v281_v58  ;;  %v283_v0 = vadd.f32 %v914_v32, %v274_v59  ;;  %v275_v1 = vadd.f32 %v267_v60, %v258_v56  ;;  %p620_p9 = scmp.ne.s32.totalorder %s992_s27, %s619_s19  ;;  %s623_s25 = sshll.u32 %s714_s28, 4  ;;  %s624_s25 = int_to_ptr.vmem [resolvable:$false] %s623_s25 }
  0x6d   : > { %290 = vst [vmem:[%s197_s14 + $0x20] sm:$0xff] %v282_v61  ;;  %v276_v2 = vadd.f32 %v268_v63, %v259_v62  ;;  %s625_s30 = scalar_lea.vmem %s624_s25, 2048  ;;  %p626_p8 = scmp.lt.s32.totalorder %s992_s27, %s624_s25 }
  0x6e   : > { %291 = vst [vmem:[%s197_s14 + $0x28] sm:$0xff] %v283_v0  ;;  %v284_v3 = vadd.f32 %v914_v32, %v275_v1  ;;  %p621_p2 = pnand %p620_p9, %p1050_p12  ;;  %p627_p7 = scmp.lt.s32.totalorder %s625_s30, %s619_s19 }
  0x6f   : > { %v285_v4 = vadd.f32 %v914_v32, %v276_v2 }
  0x70   : > { %292 = vst [vmem:[%s197_s14 + $0x30] sm:$0xff] %v284_v3  ;;  %p622_p5 = pneg %p621_p2  ;;  %p628_p10 = por %p627_p7, %p626_p8 }
  0x71   : > { %293 = vst [vmem:[%s197_s14 + $0x38] sm:$0xff] %v285_v4 }
  0x72   : > { %p629_p13 = pnand %p628_p10, %p622_p5 }
  0x74   : > { %632 = shalt.err (!%p629_p13)
}
  0x75   : > { %s633_s16 = scalar_lea.hbm %s990_s15, 1024  ;;  %s637_s5 = scalar_lea.hbm %s1042_s3, 2048 }
  0x76   : > { %p634_p1 = scmp.ne.s32.totalorder %s990_s15, %s633_s16  ;;  %p638_p11 = scmp.lt.u32.totalorder %s990_s15, %s1042_s3 }
  0x77   : > { %p639_p0 = scmp.lt.u32.totalorder %s637_s5, %s633_s16  ;;  %p641_p9 = scmp.lt.u32.totalorder %s633_s16, %s990_s15 }
  0x78   : > { %p635_p4 = pnand %p634_p1, %p1050_p12 }
  0x79   : > { %p640_p3 = por %p639_p0, %p638_p11 }
  0x7a   : > { %p636_p6 = pneg %p635_p4 }
  0x7b   : > { %p642_p2 = por %p641_p9, %p640_p3 }
  0x7d   : > { %p643_p5 = pnand %p642_p2, %p636_p6 }
  0x7f   : > { %646 = shalt.err (!%p643_p5)
}
  0x80   : > { %484 = dma.vmem_to_hbm [thread:$0]  (%p1050_p12), %s992_s27, 1024, %s990_s15, %s300_s18  }
  0x81 PF: > { %s344_s11 = sand.u32 1, %s687_s22   ;;  %p1051_p8 = scmp.ne.s32.totalorder %s1047_s9, 0 }
  0x82   : > { %p1052_p7 = scmp.ge.s32.totalorder %s707_s0, 2  ;;  %s345_s13 = scalar_lea.sflag [#allocation6], %s344_s11 }
  0x84   : > { %p492_p10 = pnand %p1052_p7, %p1051_p8 }
  0x86   : > { %678 = dma.done.wait (!%p492_p10), %s345_s13, 1024  }
  0x87   : > { %680 = vsyncadd (!%p492_p10), %s345_s13, 4294966272  ;;  %s354_s20 = scalar_lea.sflag [#allocation9], %s344_s11 }
  0x88   : > { %682 = dma.done.wait (!%p492_p10), %s354_s20, 1024  }
  0x89   : > { %684 = vsyncadd (!%p492_p10), %s354_s20, 4294966272  ;;  %s27_s0 = sadd.s32 1, %s707_s0   ;;  %s1053_s22 = smov %s691_s23 }
  0x8a   : > { %p24_p13 = scmp.ge.s32.totalorder %s27_s0, 4   ;;  %s1054_s23 = smov %s695_s24 }
  0x8b   : > { %s1055_s24 = smov %s803_s8  ;;  %s1056_s25 = smov %s703_s26 }
  0x8c   : > { %s1057_s26 = smov %s1059_s29  ;;  %26 = sbr.rel (!%p24_p13) target bundleno = 20 (0x14), region = 87 }
  0x93   :  { %359 = vsyncpa [#allocation5], 1 }
  0x94   :  { %361 = vsyncpa [#allocation5 + $0x1], 1 }
  0x95   :  { %362 = vsyncpa [#allocation6], 1 }
  0x96   :  { %364 = vsyncpa [#allocation6 + $0x1], 1 }
  0x97   :  { %365 = vsyncpa [#allocation9], 1 }
  0x98   :  { %367 = vsyncpa [#allocation9 + $0x1], 1 }

</bundles_post_ra>
